<compile_context>
chip_gen: v7x
topology: tpu7x:2x2x1
jax: 0.10.0
libtpu: 0.0.40
codegen_flags: <defaults>
</compile_context>

<pallas_src>
import functools
import math

import jax
import jax.numpy as jnp
from jax.experimental import pallas as pl
from jax.experimental.pallas import tpu as pltpu

DIM = 32          # embedding size for the toy test
MAX_LEN = 64      # small synthetic max_len (module default 5000)
DROPOUT_P = 0.0   # deterministic forward


def _build_pe(max_len: int, dim: int) -> jnp.ndarray:
    """Sinusoidal positional-encoding buffer, same as the PyTorch __init__."""
    position = jnp.arange(0.0, max_len, dtype=jnp.float32)[:, None]            # (L, 1)
    div_term = jnp.exp(jnp.arange(0.0, dim, 2.0, dtype=jnp.float32)
                       * -(math.log(10000.0) / dim))                           # (D/2,)
    angles = position * div_term                                               # (L, D/2)
    pe = jnp.zeros((max_len, dim), dtype=jnp.float32)
    pe = pe.at[:, 0::2].set(jnp.sin(angles))
    pe = pe.at[:, 1::2].set(jnp.cos(angles))
    return pe[:, None, :]                                                      # (L, 1, D)


# --------------------------------------------------------------------------------------
# Kernels
# --------------------------------------------------------------------------------------

def _posenc_kernel_3d(emb_ref, pe_ref, out_ref, *, scale: float):
    # emb_ref/out_ref: (ts, B, D) tile; pe_ref: (ts, 1, D) per-step tile.
    # pe broadcasts over the batch axis (near-free VPU replicate, no VMEM temp).
    acc = emb_ref[...].astype(jnp.float32) * jnp.float32(scale) + pe_ref[...]
    out_ref[...] = acc.astype(out_ref.dtype)


def _posenc_kernel_flat(emb_ref, pe_ref, out_ref, *, batch: int, scale: float):
    # Fallback path (D % 128 != 0). emb_ref/out_ref: (ts, B*D); pe_ref: (ts, D).
    pe_wide = jnp.concatenate([pe_ref[...]] * batch, axis=-1)          # (ts, B*D)
    acc = emb_ref[...].astype(jnp.float32) * jnp.float32(scale) + pe_wide
    out_ref[...] = acc.astype(out_ref.dtype)


# --------------------------------------------------------------------------------------
# Wrapper
# --------------------------------------------------------------------------------------

def _choose_seq_tile(S: int, row_bytes: int, target_block_bytes: int,
                     min_blocks: int = 4) -> int:
    """Rows per block: ~target_block_bytes, but keep >= min_blocks grid steps when S allows
    (so v7x's two TensorCores both stream and the pipeline has blocks to overlap)."""
    ts = max(1, target_block_bytes // max(1, row_bytes))
    if S >= 8 * min_blocks:
        ts = min(ts, pl.cdiv(S, min_blocks))
    if ts < S:
        ts = max(8, (ts // 8) * 8)        # sublane (8) constraint for partial tiles
    return min(ts, S)


def positional_encoding(emb: jnp.ndarray, pe: jnp.ndarray,
                        *, target_block_bytes: int = 4 << 20) -> jnp.ndarray:
    """emb: (S, B, D); pe: (max_len, 1, D) float32. Returns emb*sqrt(D) + pe[:S]."""
    S, B, D = emb.shape
    max_len = pe.shape[0]
    assert S <= max_len, f"seq_len {S} exceeds positional-encoding max_len {max_len}"

    itemsize = jnp.dtype(emb.dtype).itemsize
    row_bytes = B * D * itemsize
    ts = _choose_seq_tile(S, row_bytes, target_block_bytes)
    num_blocks = pl.cdiv(S, ts)

    # Explicit VMEM budget: double-buffered emb-in + out + pe blocks (+ headroom).
    emb_block_bytes = ts * row_bytes
    pe_block_bytes = ts * D * 4
    vmem_needed = 4 * emb_block_bytes + 2 * pe_block_bytes + (2 << 20)
    vmem_limit = int(min(max(vmem_needed, 16 << 20), 64 << 20))

    cost = pl.CostEstimate(
        flops=2 * S * B * D,
        transcendentals=0,
        bytes_accessed=2 * S * B * D * itemsize + S * D * 4,
    )
    cparams = pltpu.CompilerParams(
        dimension_semantics=("parallel",),
        vmem_limit_bytes=vmem_limit,
    )
    scale = math.sqrt(D)

    if D % 128 == 0:
        # Lane-dense main path: 3-D blocks, pe broadcast over batch inside the kernel.
        pe3d = pe[:S].astype(jnp.float32)                              # (S, 1, D)
        kernel = functools.partial(_posenc_kernel_3d, scale=scale)
        return pl.pallas_call(
            kernel,
            out_shape=jax.ShapeDtypeStruct((S, B, D), emb.dtype),
            grid=(num_blocks,),
            in_specs=[
                pl.BlockSpec((ts, B, D), lambda i: (i, 0, 0)),
                pl.BlockSpec((ts, 1, D), lambda i: (i, 0, 0)),
            ],
            out_specs=pl.BlockSpec((ts, B, D), lambda i: (i, 0, 0)),
            compiler_params=cparams,
            cost_estimate=cost,
        )(emb, pe3d)

    # Fallback (D % 128 != 0): flatten to a (S, B*D) slab (free, contiguous reshape) so the
    # output last dim is as lane-dense as the shape allows; pe concat only happens here.
    emb2d = emb.reshape(S, B * D)
    pe2d = pe[:S, 0, :].astype(jnp.float32)                            # (S, D)
    kernel = functools.partial(_posenc_kernel_flat, batch=B, scale=scale)
    out2d = pl.pallas_call(
        kernel,
        out_shape=jax.ShapeDtypeStruct((S, B * D), emb.dtype),
        grid=(num_blocks,),
        in_specs=[
            pl.BlockSpec((ts, B * D), lambda i: (i, 0)),
            pl.BlockSpec((ts, D), lambda i: (i, 0)),
        ],
        out_specs=pl.BlockSpec((ts, B * D), lambda i: (i, 0)),
        compiler_params=cparams,
        cost_estimate=cost,
    )(emb2d, pe2d)
    return out2d.reshape(S, B, D)


def positional_encoding_ref(emb, pe):
    return emb * math.sqrt(emb.shape[-1]) + pe[: emb.shape[0]].astype(emb.dtype)


if __name__ == "__main__":
    key = jax.random.PRNGKey(0)
    k1, k2 = jax.random.split(key)

    # Small shape consistent with the module: seq=8, batch=2, hidden=32 (fallback path).
    S, B, D = 8, 2, DIM
    pe = _build_pe(MAX_LEN, D)
    emb = jax.random.normal(k1, (S, B, D), dtype=jnp.float32)
    out = jax.block_until_ready(positional_encoding(emb, pe))
    ref = positional_encoding_ref(emb, pe)
    assert out.shape == (S, B, D)
    assert jnp.allclose(out, ref, atol=1e-5, rtol=1e-5), "mismatch vs reference (flat path)"

    # Also exercise the lane-dense 3-D path (D % 128 == 0).
    S2, B2, D2 = 16, 2, 128
    pe2 = _build_pe(MAX_LEN, D2)
    emb2 = jax.random.normal(k2, (S2, B2, D2), dtype=jnp.float32)
    out2 = jax.block_until_ready(positional_encoding(emb2, pe2))
    ref2 = positional_encoding_ref(emb2, pe2)
    assert out2.shape == (S2, B2, D2)
    assert jnp.allclose(out2, ref2, atol=1e-5, rtol=1e-5), "mismatch vs reference (3-D path)"

    print("KERNEL_OK")
</pallas_src>

<mosaic_0001>
module attributes {stable_mosaic.version = 11 : i64} {
  func.func @_posenc_kernel_flat(%arg0: i32, %arg1: memref<8x64xf32, #tpu.memory_space<vmem>>, %arg2: memref<8x32xf32, #tpu.memory_space<vmem>>, %arg3: memref<8x64xf32, #tpu.memory_space<vmem>>) attributes {dimension_semantics = [#tpu.dimension_semantics<parallel>], iteration_bounds = array<i64: 1>, scalar_prefetch = 0 : i64, scratch_operands = 0 : i64, tpu.core_type = #tpu.core_type<tc>, window_params = [{transform_indices = @transform_0, window_bounds = array<i64: 8, 64>}, {transform_indices = @transform_1, window_bounds = array<i64: 8, 32>}, {transform_indices = @transform_2, window_bounds = array<i64: 8, 64>}]} {
    %c0 = arith.constant 0 : index
    %c0_0 = arith.constant 0 : index
    %0 = vector.load %arg2[%c0, %c0_0] : memref<8x32xf32, #tpu.memory_space<vmem>>, vector<8x32xf32>
    %1 = tpu.concatenate %0, %0 in 1 : vector<8x32xf32>, vector<8x32xf32> -> vector<8x64xf32>
    %c0_1 = arith.constant 0 : index
    %c0_2 = arith.constant 0 : index
    %2 = vector.load %arg1[%c0_1, %c0_2] : memref<8x64xf32, #tpu.memory_space<vmem>>, vector<8x64xf32>
    %cst = arith.constant 5.65685415 : f32
    %3 = vector.broadcast %cst : f32 to vector<8x64xf32>
    %4 = arith.mulf %2, %3 : vector<8x64xf32>
    %5 = arith.addf %4, %1 : vector<8x64xf32>
    %c0_3 = arith.constant 0 : index
    %c0_4 = arith.constant 0 : index
    %6 = vector.load %arg3[%c0_3, %c0_4] : memref<8x64xf32, #tpu.memory_space<vmem>>, vector<8x64xf32>
    tpu.vector_store %arg3[%c0_3, %c0_4], %5 {strides = array<i32>} : memref<8x64xf32, #tpu.memory_space<vmem>>, vector<8x64xf32>,
    return
  }
  func.func @transform_0(%arg0: i32) -> (i32, i32) {
    %c0_i32 = arith.constant 0 : i32
    %c0_i32_0 = arith.constant 0 : i32
    return %arg0, %c0_i32 : i32, i32
  }
  func.func @transform_1(%arg0: i32) -> (i32, i32) {
    %c0_i32 = arith.constant 0 : i32
    %c0_i32_0 = arith.constant 0 : i32
    return %arg0, %c0_i32 : i32, i32
  }
  func.func @transform_2(%arg0: i32) -> (i32, i32) {
    %c0_i32 = arith.constant 0 : i32
    %c0_i32_0 = arith.constant 0 : i32
    return %arg0, %c0_i32 : i32, i32
  }
}

</mosaic_0001>

<bundles_post_ra>
// kernel: tpu_custom_call.1
= control target key start
LH: loop header
LB: loop body
LE: loop exit
PB: predicated region body
PF: predicated region fallthrough
CT: control target
= control target key end

     0   :  { %7 = vsyncpa [#allocation3], 0  ;;  %s195_s0 = inlined_call_operand.hbm [shape: f32[8,64], index: 0, kind: input, shape index: {}]   ;;  %s196_s1 = inlined_call_operand.hbm [shape: f32[8,32], index: 1, kind: input, shape index: {}]   ;;  %s197_s2 = inlined_call_operand.hbm [shape: f32[8,64], index: 2, kind: output, shape index: {}]  }
   0x1   :  { %8 = vsyncpa [#allocation6], 0 }
   0x2   :  { %9 = vsyncpa [#allocation4], 0  ;;  %s140_s9 = smov [#allocation2]   ;;  %s141_s11 = smov [#allocation5]  }
   0x3   :  { %s16_s10 = sshll.u32 %s140_s9, 4  ;;  %s26_s12 = sshll.u32 %s141_s11, 4  ;;  %s17_s10 = int_to_ptr.vmem [resolvable:$true] %s16_s10  ;;  %s27_s12 = int_to_ptr.vmem [resolvable:$true] %s26_s12 }
   0x4   :  { %s68_s15 = scalar_lea.hbm %s195_s0, 128 }
   0x5   :  { %p69_p0 = scmp.ne.s32.totalorder %s195_s0, %s68_s15  ;;  %p72_p1 = scmp.lt.u32.totalorder %s68_s15, %s195_s0 }
   0x7   :  { %p74_p2 = pnand %p72_p1, %p69_p0 }
   0x9   :  { %77 = shalt.err (!%p74_p2)
}
   0xa   :  { %s78_s20 = scalar_lea.vmem %s17_s10, 128  ;;  %p83_p4 = scmp.lt.s32.totalorder %s17_s10, %s17_s10 }
   0xb   :  { %p79_p3 = scmp.ne.s32.totalorder %s17_s10, %s78_s20  ;;  %p84_p5 = scmp.lt.s32.totalorder %s78_s20, %s78_s20 }
   0xd   :  { %p85_p6 = por %p84_p5, %p83_p4 }
   0xf   :  { %p86_p7 = pnand %p85_p6, %p79_p3 }
  0x11   :  { %89 = shalt.err (!%p86_p7)
}
  0x12   :  { %19 = dma.hbm_to_vmem [thread:$0]  %s195_s0, 128, %s17_s10, [#allocation3]  }
  0x13   :  { %s90_s25 = scalar_lea.hbm %s196_s1, 128 }
  0x14   :  { %p91_p8 = scmp.ne.s32.totalorder %s196_s1, %s90_s25  ;;  %p94_p9 = scmp.lt.u32.totalorder %s90_s25, %s196_s1 }
  0x16   :  { %p96_p10 = pnand %p94_p9, %p91_p8 }
  0x18   :  { %99 = shalt.err (!%p96_p10)
}
  0x19   :  { %s100_s30 = scalar_lea.vmem %s27_s12, 128  ;;  %p105_p12 = scmp.lt.s32.totalorder %s27_s12, %s27_s12 }
  0x1a   :  { %p101_p11 = scmp.ne.s32.totalorder %s27_s12, %s100_s30  ;;  %p106_p13 = scmp.lt.s32.totalorder %s100_s30, %s100_s30 }
  0x1c   :  { %p107_p0 = por %p106_p13, %p105_p12 }
  0x1e   :  { %p108_p1 = pnand %p107_p0, %p101_p11 }
  0x20   :  { %111 = shalt.err (!%p108_p1)
}
  0x21   :  { %29 = dma.hbm_to_vmem [thread:$0]  %s196_s1, 128, %s27_s12, [#allocation6]  }
  0x22   :  { %134 = dma.done.wait [#allocation3], 128  }
  0x23   :  { %135 = vsyncadd [#allocation3], 4294967168 }
  0x24   :  { %136 = dma.done.wait [#allocation6], 128  }
  0x25   :  { %137 = vsyncadd [#allocation6], 4294967168  ;;  %v36_v0 = vld [vmem:[#allocation5] sm:$0xff]  ;;  %s142_s4 = smov 32   ;;  %v43_v1 = vld [vmem:[#allocation2] sm:$0xff]  ;;  %vm41_vm0 = vcmask 261120  }
  0x26   :  { %38 = vrot.lane.b32.xlu0 %v36_v0, %s142_s4  ;;  %v44_v2 = vmul.f32 5.656854, %v43_v1  ;;  %s143_s5 = smov [#allocation7]   ;;  %vm46_vm1 = vcmask 523264  }
  0x27   :  { %s54_s6 = sshll.u32 %s143_s5, 4  ;;  %s55_s6 = int_to_ptr.vmem [resolvable:$true] %s54_s6 }
  0x28   :  { %s112_s7 = scalar_lea.vmem %s55_s6, 128  ;;  %p117_p3 = scmp.lt.s32.totalorder %s55_s6, %s55_s6 }
  0x29   :  { %p113_p2 = scmp.ne.s32.totalorder %s55_s6, %s112_s7  ;;  %p118_p4 = scmp.lt.s32.totalorder %s112_s7, %s112_s7 }
  0x2b   :  { %p119_p5 = por %p118_p4, %p117_p3 }
  0x2d   :  { %p120_p6 = pnand %p119_p5, %p113_p2 }
  0x98   :  { %v39_v3 = vpop.permute.xlu0 %38 }
  0x99   :  { %v42_v4 = vsel %vm41_vm0, %v36_v0, %v39_v3 }
  0x9a   :  { %v45_v5 = vadd.f32 %v44_v2, %v42_v4 }
  0x9c   :  { %47 = vst.msk [vmem:[#allocation7] sm:$0xff] %vm46_vm1, %v45_v5 }
  0x9d   :  { %123 = shalt.err (!%p120_p6)
}
  0x9e   :  { %s124_s9 = scalar_lea.hbm %s197_s2, 128 }
  0x9f   :  { %p125_p7 = scmp.ne.s32.totalorder %s197_s2, %s124_s9  ;;  %p128_p8 = scmp.lt.u32.totalorder %s124_s9, %s197_s2 }
  0xa1   :  { %p130_p9 = pnand %p128_p8, %p125_p7 }
  0xa3   :  { %133 = shalt.err (!%p130_p9)
}
  0xa4   :  { %57 = dma.vmem_to_hbm [thread:$0]  %s55_s6, 128, %s197_s2, [#allocation4]  }
  0xa5   :  { %138 = dma.done.wait [#allocation4], 128  }
  0xa6   :  { %139 = vsyncadd [#allocation4], 4294967168 }
  0xa7   :  { %61 = vsyncpa [#allocation3], 1 }
  0xa8   :  { %62 = vsyncpa [#allocation6], 1 }
  0xa9   :  { %63 = vsyncpa [#allocation4], 1 }

</bundles_post_ra>
